<compile_context>
chip_gen: v7x
topology: tpu7x:2x2x1
jax: 0.10.0
libtpu: 0.0.40
codegen_flags: <defaults>
</compile_context>

<pallas_src>
import functools

import jax
import jax.numpy as jnp
import numpy as np
from jax.experimental import pallas as pl
from jax.experimental.pallas import tpu as pltpu

_LANES = 128
_SUBLANES = 8


def _round_up(x, m):
    return (x + m - 1) // m * m


def lgm_kernel(x_ref, w_ref, bias_ref, logits_ref, lse_ref, *, batch, tile_b):
    # One fused MXU matmul (NT contraction, no transpose materialized):
    #   X tile   : [TB, 2D]   (pipelined over the batch grid axis)
    #   W        : [Cp, 2D]   (resident)
    #   bias     : [1, Cp]    (resident)
    logits = jax.lax.dot_general(
        x_ref[...], w_ref[...],
        dimension_numbers=(((1,), (1,)), ((), ())),
        preferred_element_type=jnp.float32) + bias_ref[...]          # [TB, Cp]
    logits_ref[...] = logits

    # Per-row logsumexp over (padded) classes; padded classes carry a -1e30
    # bias so they contribute exactly 0 after the max-shift exp.
    m = jnp.max(logits, axis=-1, keepdims=True)                      # [TB, 1]
    lse = m + jnp.log(jnp.sum(jnp.exp(logits - m), axis=-1, keepdims=True))

    if batch % tile_b != 0:
        # Only the last tile can contain padded batch rows; mask them out.
        row = (jax.lax.broadcasted_iota(jnp.int32, lse.shape, 0)
               + pl.program_id(0) * tile_b)
        lse = jnp.where(row < batch, lse, 0.0)

    # Emit the per-tile partial sum as a lane-dense (1, 128) row (unmasked vst)
    # instead of a lane-sparse [B, 1] per-sample stream.
    part = jnp.sum(lse, axis=0, keepdims=True)                        # [1, 1]
    lse_ref[...] = jnp.broadcast_to(part, (1, _LANES))


@functools.partial(jax.jit, static_argnames=("l1",))
def lgm_forward(feat, centers, log_covs, targets, l1):
    B, D = feat.shape
    C = centers.shape[0]

    tile_b = 256 if B >= 256 else _round_up(B, _SUBLANES)
    Bp = _round_up(B, tile_b)
    Cp = _round_up(C, _LANES)
    num_tiles = Bp // tile_b
    twoD = 2 * D

    # ---- Precompute folded weights / bias once (outside the grid loop). ----
    inv_cov = jnp.exp(-log_covs)                                       # [C, D]
    w = jnp.concatenate([-0.5 * inv_cov, centers * inv_cov], axis=1)   # [C, 2D]
    bias = -0.5 * (jnp.sum(log_covs, axis=-1)
                   + jnp.sum(centers * centers * inv_cov, axis=-1))    # [C]
    x = jnp.concatenate([feat * feat, feat], axis=1)                   # [B, 2D]

    if Bp != B:
        x = jnp.pad(x, ((0, Bp - B), (0, 0)))
    if Cp != C:
        w = jnp.pad(w, ((0, Cp - C), (0, 0)))
        bias = jnp.pad(bias, (0, Cp - C), constant_values=-1e30)
    bias2d = bias.reshape(1, Cp)

    kernel = functools.partial(lgm_kernel, batch=B, tile_b=tile_b)

    cost = pl.CostEstimate(
        flops=2 * Bp * Cp * twoD + 6 * Bp * Cp,
        transcendentals=Bp * Cp + Bp,
        bytes_accessed=4 * (Bp * twoD + Cp * twoD + Cp
                            + Bp * Cp + num_tiles * _LANES))

    logits_p, lse_part = pl.pallas_call(
        kernel,
        out_shape=(
            jax.ShapeDtypeStruct((Bp, Cp), jnp.float32),
            jax.ShapeDtypeStruct((num_tiles, _LANES), jnp.float32),
        ),
        grid=(num_tiles,),
        in_specs=[
            pl.BlockSpec((tile_b, twoD), lambda i: (i, 0)),   # X tile (pipelined)
            pl.BlockSpec((Cp, twoD), lambda i: (0, 0)),       # W (resident)
            pl.BlockSpec((1, Cp), lambda i: (0, 0)),          # bias (resident)
        ],
        out_specs=(
            pl.BlockSpec((tile_b, Cp), lambda i: (i, 0)),     # logits tile
            pl.BlockSpec((1, _LANES), lambda i: (i, 0)),      # per-tile lse sum
        ),
        compiler_params=pltpu.CompilerParams(
            dimension_semantics=("parallel",),
            vmem_limit_bytes=48 * 1024 * 1024),
        cost_estimate=cost,
    )(x, w, bias2d)

    logits = logits_p[:B, :C]

    # Cheap glue: target-class pick (O(B) gather) and final scalar means.
    tgt = targets.astype(jnp.int32)
    picked = jnp.take_along_axis(logits, tgt[:, None], axis=1)[:, 0]   # [B]
    mean_lse = jnp.sum(lse_part[:, 0]) / B
    mean_picked = jnp.mean(picked)
    # loss = mean(CE) + l1 * mean(likelihood)
    #      = (mean(lse) - mean(picked)) + l1 * (-mean(picked))
    loss = (mean_lse - mean_picked) + l1 * (-mean_picked)
    return loss, logits


def reference_forward(feat, centers, log_covs, targets, l1):
    """Pure-JAX reference mirroring the PyTorch module."""
    covs = jnp.exp(log_covs)                                 # [C, D]
    diff = feat[:, None, :] - centers[None, :, :]            # [B, C, D]
    dist = jnp.sum(diff * diff / covs[None, :, :], axis=-1)  # [B, C]
    slog = jnp.sum(log_covs, axis=-1)                        # [C]
    logits = -0.5 * (slog[None, :] + dist)                   # [B, C]
    B = feat.shape[0]
    picked = logits[jnp.arange(B), targets]
    likelihood = -picked
    logp = jax.nn.log_softmax(logits, axis=-1)
    ce = -logp[jnp.arange(B), targets]
    loss = jnp.mean(ce) + l1 * jnp.mean(likelihood)
    return loss, logits


if __name__ == "__main__":
    # small shapes consistent with LGM(num_classes, feat_dim) on [B, feat_dim]
    B, D, C = 8, 32, 16
    L1 = 0.1

    key = jax.random.PRNGKey(0)
    k_feat, k_centers, k_targets = jax.random.split(key, 3)

    feat = jax.random.normal(k_feat, (B, D), dtype=jnp.float32)
    # parameters: centers ~ randn, log_covs = zeros (as in __init__)
    centers = jax.random.normal(k_centers, (C, D), dtype=jnp.float32)
    log_covs = jnp.zeros((C, D), dtype=jnp.float32)
    targets = jax.random.randint(k_targets, (B,), 0, C, dtype=jnp.int32)

    loss, logits = lgm_forward(feat, centers, log_covs, targets, L1)
    jax.block_until_ready((loss, logits))

    ref_loss, ref_logits = reference_forward(feat, centers, log_covs, targets, L1)
    np.testing.assert_allclose(np.asarray(logits), np.asarray(ref_logits),
                               rtol=1e-4, atol=1e-4)
    np.testing.assert_allclose(np.asarray(loss), np.asarray(ref_loss),
                               rtol=1e-4, atol=1e-4)

    print("KERNEL_OK")
</pallas_src>

<mosaic_0001>
module attributes {stable_mosaic.version = 11 : i64} {
  func.func @lgm_kernel(%arg0: i32, %arg1: memref<8x64xf32, #tpu.memory_space<vmem>>, %arg2: memref<128x64xf32, #tpu.memory_space<vmem>>, %arg3: memref<1x128xf32, #tpu.memory_space<vmem>>, %arg4: memref<8x128xf32, #tpu.memory_space<vmem>>, %arg5: memref<1x128xf32, #tpu.memory_space<vmem>>) attributes {dimension_semantics = [#tpu.dimension_semantics<parallel>], iteration_bounds = array<i64: 1>, scalar_prefetch = 0 : i64, scratch_operands = 0 : i64, tpu.core_type = #tpu.core_type<tc>, window_params = [{transform_indices = @transform_0, window_bounds = array<i64: 8, 64>}, {pipeline_mode = #tpu.pipeline_mode<synchronous>, transform_indices = @transform_1, window_bounds = array<i64: 128, 64>}, {pipeline_mode = #tpu.pipeline_mode<synchronous>, transform_indices = @transform_2, window_bounds = array<i64: 1, 128>}, {transform_indices = @transform_3, window_bounds = array<i64: 8, 128>}, {transform_indices = @transform_4, window_bounds = array<i64: 1, 128>}]} {
    %c0 = arith.constant 0 : index
    %c0_0 = arith.constant 0 : index
    %0 = vector.load %arg1[%c0, %c0_0] : memref<8x64xf32, #tpu.memory_space<vmem>>, vector<8x64xf32>
    %c0_1 = arith.constant 0 : index
    %c0_2 = arith.constant 0 : index
    %1 = vector.load %arg2[%c0_1, %c0_2] : memref<128x64xf32, #tpu.memory_space<vmem>>, vector<128x64xf32>
    %cst = arith.constant dense<0.000000e+00> : vector<8x128xf32>
    %2 = tpu.matmul %0, %1, %cst {dimension_numbers = #tpu.dot_dimension_numbers<[1], [1], [0], [0], [0, 0, 1, 0], [], []>} : vector<8x64xf32>, vector<128x64xf32>, vector<8x128xf32> -> vector<8x128xf32>
    %c0_3 = arith.constant 0 : index
    %c0_4 = arith.constant 0 : index
    %3 = vector.load %arg3[%c0_3, %c0_4] : memref<1x128xf32, #tpu.memory_space<vmem>>, vector<1x128xf32>
    %4 = vector.broadcast %3 : vector<1x128xf32> to vector<8x128xf32>
    %5 = arith.addf %2, %4 : vector<8x128xf32>
    %c0_5 = arith.constant 0 : index
    %c0_6 = arith.constant 0 : index
    %6 = vector.load %arg4[%c0_5, %c0_6] : memref<8x128xf32, #tpu.memory_space<vmem>>, vector<8x128xf32>
    tpu.vector_store %arg4[%c0_5, %c0_6], %5 {strides = array<i32>} : memref<8x128xf32, #tpu.memory_space<vmem>>, vector<8x128xf32>,
    %cst_7 = arith.constant dense<0xFF800000> : vector<8xf32>
    %7 = vector.multi_reduction <maximumf>, %5, %cst_7 [1] : vector<8x128xf32> to vector<8xf32>
    %8 = vector.shape_cast %7 : vector<8xf32> to vector<8x1xf32>
    %9 = vector.broadcast %8 : vector<8x1xf32> to vector<8x128xf32>
    %10 = arith.subf %5, %9 : vector<8x128xf32>
    %11 = math.exp %10 : vector<8x128xf32>
    %cst_8 = arith.constant dense<0.000000e+00> : vector<8xf32>
    %12 = vector.multi_reduction <add>, %11, %cst_8 [1] : vector<8x128xf32> to vector<8xf32>
    %13 = vector.shape_cast %12 : vector<8xf32> to vector<8x1xf32>
    %14 = math.log %13 : vector<8x1xf32>
    %15 = arith.addf %8, %14 : vector<8x1xf32>
    %cst_9 = arith.constant dense<0.000000e+00> : vector<1xf32>
    %16 = vector.multi_reduction <add>, %15, %cst_9 [0] : vector<8x1xf32> to vector<1xf32>
    %17 = vector.shape_cast %16 : vector<1xf32> to vector<1x1xf32>
    %18 = vector.shape_cast %17 : vector<1x1xf32> to vector<1x1xf32>
    %19 = vector.broadcast %18 : vector<1x1xf32> to vector<1x128xf32>
    %c0_10 = arith.constant 0 : index
    %c0_11 = arith.constant 0 : index
    %20 = vector.load %arg5[%c0_10, %c0_11] : memref<1x128xf32, #tpu.memory_space<vmem>>, vector<1x128xf32>
    tpu.vector_store %arg5[%c0_10, %c0_11], %19 {strides = array<i32>} : memref<1x128xf32, #tpu.memory_space<vmem>>, vector<1x128xf32>,
    return
  }
  func.func @transform_0(%arg0: i32) -> (i32, i32) {
    %c0_i32 = arith.constant 0 : i32
    %c0_i32_0 = arith.constant 0 : i32
    return %arg0, %c0_i32 : i32, i32
  }
  func.func @transform_1(%arg0: i32) -> (i32, i32) {
    %c0_i32 = arith.constant 0 : i32
    %c0_i32_0 = arith.constant 0 : i32
    %c0_i32_1 = arith.constant 0 : i32
    return %c0_i32, %c0_i32_0 : i32, i32
  }
  func.func @transform_2(%arg0: i32) -> (i32, i32) {
    %c0_i32 = arith.constant 0 : i32
    %c0_i32_0 = arith.constant 0 : i32
    %c0_i32_1 = arith.constant 0 : i32
    return %c0_i32, %c0_i32_0 : i32, i32
  }
  func.func @transform_3(%arg0: i32) -> (i32, i32) {
    %c0_i32 = arith.constant 0 : i32
    %c0_i32_0 = arith.constant 0 : i32
    return %arg0, %c0_i32 : i32, i32
  }
  func.func @transform_4(%arg0: i32) -> (i32, i32) {
    %c0_i32 = arith.constant 0 : i32
    %c0_i32_0 = arith.constant 0 : i32
    return %arg0, %c0_i32 : i32, i32
  }
}

</mosaic_0001>

<bundles_post_ra>
// kernel: mul.14
= control target key start
LH: loop header
LB: loop body
LE: loop exit
PB: predicated region body
PF: predicated region fallthrough
CT: control target
= control target key end

     0   :  { %s34_s0 = inlined_call_operand.vmem [shape: f32[8,32], index: 0, kind: input, shape index: {}, may-alias: {0,1}]   ;;  %s35_s1 = inlined_call_operand.vmem [shape: f32[8,32], index: 1, kind: input, shape index: {}, may-alias: {0,1}]   ;;  %s36_s2 = inlined_call_operand.vmem [shape: f32[8,32], index: 2, kind: output, shape index: {}]  }
   0x1   :  { %v3_v0 = vld [vmem:[%s34_s0] sm:$0xff] }
   0x2   :  { %v4_v1 = vld [vmem:[%s35_s1] sm:$0xff] }
   0x3   :  { %v7_v2 = vmul.f32 %v4_v1, %v3_v0 }
   0x5   :  { %9 = vst [vmem:[%s36_s2] sm:$0xff] %v7_v2 }

// kernel: lgm_forward.1
= control target key start
LH: loop header
LB: loop body
LE: loop exit
PB: predicated region body
PF: predicated region fallthrough
CT: control target
= control target key end

     0   :  { %vm40_vm0 = vcmask 523264   ;;  %v297_v0 = vmov 0.0|0.0   ;;  %vm298_vm2 = vmmov 0   ;;  %v299_v4 = vmov 0.0   ;;  %s408_s1 = inlined_call_operand.vmem [shape: f32[128,64], index: 1, kind: input, shape index: {}]   ;;  %s409_s0 = inlined_call_operand.vmem [shape: f32[8,64], index: 0, kind: input, shape index: {}]   ;;  %s410_s2 = inlined_call_operand.vmem [shape: f32[1,128], index: 2, kind: input, shape index: {}]   ;;  %s411_s3 = inlined_call_operand.vmem [shape: f32[8,128], index: 3, kind: output, shape index: {0}]   ;;  %s412_s4 = inlined_call_operand.vmem [shape: f32[1,128], index: 4, kind: output, shape index: {1}]  }
   0x1   :  { %258 = vmatprep.subr.bf16.mxu0 %v297_v0  ;;  %v17_v1 = vld [vmem:[%s408_s1] sm:$0xff]  ;;  %v18_v2 = vld [vmem:[%s408_s1 + $0x8] sm:$0xff]  ;;  %vm333_vm1 = vmpackc.low %vm40_vm0, %vm40_vm0  ;;  %255 = vmatprep.mubr.msk.f32.mxu0 %vm298_vm2, %v299_v4 }
   0x2   :  { %v259_v5 = vpack.c.bf16 %v18_v2, %v17_v1  ;;  %v19_v6 = vld [vmem:[%s408_s1 + $0x10] sm:$0xff]  ;;  %v20_v7 = vld [vmem:[%s408_s1 + $0x18] sm:$0xff]  ;;  %v21_v9 = vld [vmem:[%s408_s1 + $0x20] sm:$0xff] }
   0x3   :  { %v263_v8 = vpack.c.bf16 %v20_v7, %v19_v6  ;;  %v22_v10 = vld [vmem:[%s408_s1 + $0x28] sm:$0xff]  ;;  %v23_v12 = vld [vmem:[%s408_s1 + $0x30] sm:$0xff]  ;;  %v24_v13 = vld [vmem:[%s408_s1 + $0x38] sm:$0xff] }
   0x4   :  { %261 = vmatpush3.bf16.xpose.msk.msra.mxu0 %vm333_vm1, %v259_v5  ;;  %v267_v11 = vpack.c.bf16 %v22_v10, %v21_v9  ;;  %v271_v14 = vpack.c.bf16 %v24_v13, %v23_v12  ;;  %v25_v15 = vld [vmem:[%s408_s1 + $0x40] sm:$0xff]  ;;  %v26_v16 = vld [vmem:[%s408_s1 + $0x48] sm:$0xff]  ;;  %v27_v18 = vld [vmem:[%s408_s1 + $0x50] sm:$0xff] }
   0x5   :  { %262 = vmatprep.subr.bf16.mxu0 %v297_v0  ;;  %v275_v17 = vpack.c.bf16 %v26_v16, %v25_v15  ;;  %v28_v19 = vld [vmem:[%s408_s1 + $0x58] sm:$0xff]  ;;  %v29_v21 = vld [vmem:[%s408_s1 + $0x60] sm:$0xff]  ;;  %v30_v22 = vld [vmem:[%s408_s1 + $0x68] sm:$0xff] }
   0x6   :  { %v279_v20 = vpack.c.bf16 %v28_v19, %v27_v18  ;;  %v283_v23 = vpack.c.bf16 %v30_v22, %v29_v21  ;;  %v31_v24 = vld [vmem:[%s408_s1 + $0x70] sm:$0xff]  ;;  %v32_v25 = vld [vmem:[%s408_s1 + $0x78] sm:$0xff]  ;;  %v16_v27 = vld [vmem:[%s409_s0] sm:$0xff] }
   0x7   :  { %v287_v26 = vpack.c.bf16 %v32_v25, %v31_v24  ;;  %v188_v28 = vld [vmem:[%s410_s2] ss:$0 sm:$0xff] }
   0xc   :  { %265 = vmatpush3.bf16.xpose.msk.msra.mxu0 %vm333_vm1, %v263_v8 }
   0xd   :  { %266 = vmatprep.subr.bf16.mxu0 %v297_v0 }
  0x14   :  { %269 = vmatpush3.bf16.xpose.msk.msra.mxu0 %vm333_vm1, %v267_v11 }
  0x15   :  { %270 = vmatprep.subr.bf16.mxu0 %v297_v0 }
  0x1c   :  { %273 = vmatpush3.bf16.xpose.msk.msra.mxu0 %vm333_vm1, %v271_v14 }
  0x1d   :  { %274 = vmatprep.subr.bf16.mxu0 %v297_v0 }
  0x24   :  { %277 = vmatpush3.bf16.xpose.msk.msra.mxu0 %vm333_vm1, %v275_v17 }
  0x25   :  { %278 = vmatprep.subr.bf16.mxu0 %v297_v0 }
  0x2c   :  { %281 = vmatpush3.bf16.xpose.msk.msra.mxu0 %vm333_vm1, %v279_v20 }
  0x2d   :  { %282 = vmatprep.subr.bf16.mxu0 %v297_v0 }
  0x34   :  { %285 = vmatpush3.bf16.xpose.msk.msra.mxu0 %vm333_vm1, %v283_v23 }
  0x35   :  { %286 = vmatprep.subr.bf16.mxu0 %v297_v0 }
  0x3c   :  { %289 = vmatpush3.bf16.xpose.msk.msra.mxu0 %vm333_vm1, %v287_v26 }
  0x43   :  { %256 = vmatmul.mubr.msk.f32.vlgmr.msra.gmra.mrb[0].mxu0 %vm40_vm0, %v16_v27 }
 0x116   :  { %v158_v29 = vpop.f32.mrb[0].mxu0 }
 0x117   :  { %v159_v30 = vadd.f32 %v188_v28, %v158_v29  ;;  %v257_v31 = vpop.f32.mrb[1].mxu0 }
 0x119   :  { %162 = vst [vmem:[%s411_s3] sm:$0xff] %v159_v30  ;;  %163 = vmax.xlane.f32.xlu0 %v159_v30 }
 0x1a6   :  { %v164_v32 = vpop.xlane.xlu0 %163 }
 0x1a7   :  { %v165_v33 = vsub.f32 %v159_v30, %v164_v32 }
 0x1a9   :  { %v166_v34 = vmul.f32 1.442695, %v165_v33 }
 0x1ab   :  { %293 = vpow2.f32 %v166_v34 }
 0x1b5   :  { %v294_v35 = vpop.eup %293 }
 0x1b6   :  { %168 = vadd.xlane.f32.xlu0 %v294_v35 }
 0x243   :  { %v169_v36 = vpop.xlane.xlu0 %168 }
 0x244   :  { %295 = vlog2.f32 %v169_v36 }
 0x24e   :  { %v296_v37 = vpop.eup %295 }
 0x24f   :  { %v171_v38 = vmul.f32 0.6931472, %v296_v37 }
 0x251   :  { %v172_v39 = vadd.f32 %v171_v38, %v164_v32 }
 0x253   :  { %v173_v40 = vrot.slane %v172_v39, 4 }
 0x255   :  { %v174_v41 = vadd.f32 %v173_v40, %v172_v39 }
 0x257   :  { %v175_v42 = vrot.slane %v174_v41, 2 }
 0x259   :  { %v176_v43 = vadd.f32 %v175_v42, %v174_v41 }
 0x25b   :  { %v177_v44 = vrot.slane %v176_v43, 1 }
 0x25d   :  { %v178_v45 = vadd.f32 %v177_v44, %v176_v43 }
 0x25f   :  { %179 = vst [vmem:[%s412_s4] sm:$0x1] %v178_v45 }

</bundles_post_ra>
